<compile_context>
chip_gen: v5e
topology: v5e:2x2
jax: 0.10.0
libtpu: 0.0.40
codegen_flags: <defaults>
</compile_context>

<pallas_src>
import functools

import jax
import jax.numpy as jnp
from jax.experimental import pallas as pl
from jax.experimental.pallas import tpu as pltpu


# ---------------------------------------------------------------------------
# Kernel: fused conv3x3+bias+ReLU -> conv3x3+bias+ReLU for one batch element.
# ---------------------------------------------------------------------------
def _stage_kernel(x_ref, w0_ref, b0_ref, w1_ref, b1_ref, o_ref,
                  xpad_ref, apad_ref, *, H, W, C0, C1, C2):
    """
    x_ref   : (1, H, W*C0)    f32   lane-packed NHWC input (unpadded)
    w0_ref  : (3, W*C0, W*C1) bf16  block-Toeplitz weights (one per vertical tap)
    b0_ref  : (1, W*C1)       f32   bias tiled across W
    w1_ref  : (3, W*C1, W*C2) bf16
    b1_ref  : (1, W*C2)       f32
    o_ref   : (1, H, W*C2)    f32   lane-packed NHWC output
    xpad_ref: (H+2, W*C0)     f32   VMEM scratch: vertically padded layer-0 input
    apad_ref: (H+2, W*C1)     f32   VMEM scratch: vertically padded layer-0 act
    """
    f32 = jnp.float32
    bf16 = jnp.bfloat16

    # ----- layer 0: vertical zero pad in VMEM, 3 Toeplitz matmuls on the MXU -----
    zrow0 = jnp.zeros((1, W * C0), f32)
    xpad_ref[0:1, :] = zrow0
    xpad_ref[H + 1:H + 2, :] = zrow0
    xpad_ref[1:H + 1, :] = x_ref[0]

    acc0 = jnp.zeros((H, W * C1), f32)
    for dy in range(3):                                   # static unroll
        acc0 += jnp.dot(xpad_ref[dy:dy + H, :].astype(bf16),
                        w0_ref[dy],
                        preferred_element_type=f32)
    act0 = jnp.maximum(acc0 + b0_ref[...], 0.0)           # bias + ReLU in f32

    # ----- layer 1: intermediate stays in VMEM (no HBM round trip) -----
    zrow1 = jnp.zeros((1, W * C1), f32)
    apad_ref[0:1, :] = zrow1
    apad_ref[H + 1:H + 2, :] = zrow1
    apad_ref[1:H + 1, :] = act0

    acc1 = jnp.zeros((H, W * C2), f32)
    for dy in range(3):
        acc1 += jnp.dot(apad_ref[dy:dy + H, :].astype(bf16),
                        w1_ref[dy],
                        preferred_element_type=f32)
    out = jnp.maximum(acc1 + b1_ref[...], 0.0)

    o_ref[0] = out.astype(o_ref.dtype)


# ---------------------------------------------------------------------------
# Weight re-layout: fold horizontal taps + horizontal padding into a
# block-Toeplitz matrix acting on lane-packed rows.  Done once at init.
# ---------------------------------------------------------------------------
def _toeplitz_conv_weight(w, width):
    """(3,3,Cin,Cout) HWIO conv weight -> (3, width*Cin, width*Cout)."""
    kh, kw, cin, cout = w.shape
    wt = jnp.zeros((kh, width * cin, width * cout), dtype=w.dtype)
    half = kw // 2
    for dx in range(kw):
        for x in range(width):
            xin = x + dx - half          # input column for output column x
            if 0 <= xin < width:         # out-of-range == horizontal zero pad
                wt = wt.at[:, xin * cin:(xin + 1) * cin,
                           x * cout:(x + 1) * cout].set(w[:, dx])
    return wt


# ---------------------------------------------------------------------------
# Wrapper (jitted so the NCHW <-> lane-packed reshapes fuse with operand copies)
# ---------------------------------------------------------------------------
@functools.partial(jax.jit, static_argnames=("H", "W", "C0", "C1", "C2"))
def _stage_forward(x_nchw, w0t, b0t, w1t, b1t, *, H, W, C0, C1, C2):
    B = x_nchw.shape[0]
    # NCHW (PyTorch) -> lane-packed (B, H, W*C0)
    x = jnp.transpose(x_nchw, (0, 2, 3, 1)).reshape(B, H, W * C0)

    kernel = functools.partial(_stage_kernel, H=H, W=W, C0=C0, C1=C1, C2=C2)

    flops = 2 * B * H * 3 * ((W * C0) * (W * C1) + (W * C1) * (W * C2))
    bytes_accessed = (x.size * 4 + w0t.size * 2 + w1t.size * 2
                      + b0t.size * 4 + b1t.size * 4 + B * H * W * C2 * 4)

    y = pl.pallas_call(
        kernel,
        out_shape=jax.ShapeDtypeStruct((B, H, W * C2), jnp.float32),
        grid_spec=pltpu.PrefetchScalarGridSpec(
            num_scalar_prefetch=0,
            grid=(B,),
            in_specs=[
                pl.BlockSpec((1, H, W * C0), lambda b: (b, 0, 0)),
                pl.BlockSpec((3, W * C0, W * C1), lambda b: (0, 0, 0)),
                pl.BlockSpec((1, W * C1), lambda b: (0, 0)),
                pl.BlockSpec((3, W * C1, W * C2), lambda b: (0, 0, 0)),
                pl.BlockSpec((1, W * C2), lambda b: (0, 0)),
            ],
            out_specs=pl.BlockSpec((1, H, W * C2), lambda b: (b, 0, 0)),
            scratch_shapes=[
                pltpu.VMEM((H + 2, W * C0), jnp.float32),
                pltpu.VMEM((H + 2, W * C1), jnp.float32),
            ],
        ),
        compiler_params=pltpu.CompilerParams(
            dimension_semantics=("parallel",)),     # megacore shard over batch (v7x)
        cost_estimate=pl.CostEstimate(
            flops=flops, transcendentals=0, bytes_accessed=bytes_accessed),
    )(x, w0t, b0t, w1t, b1t)

    # lane-packed -> NHWC -> NCHW (PyTorch output convention)
    return jnp.transpose(y.reshape(B, H, W, C2), (0, 3, 1, 2))


class StagePallas:
    """JAX/Pallas equivalent of `Stage` for a concrete 2-layer conv stem."""

    def __init__(self, out_channels, params, height, width):
        assert len(params) == 2, "fused kernel instantiates a 2-layer stage"
        self.out_channels = out_channels
        self.params = params                 # [(w (3,3,Cin,Cout) f32, b (Cout,) f32)]
        self.H, self.W = height, width
        (w0, b0), (w1, b1) = params
        self.C0, self.C1 = w0.shape[2], w0.shape[3]
        self.C2 = w1.shape[3]
        # Pre-pack weights once: block-Toeplitz layout + bf16 for the MXU.
        self.w0t = _toeplitz_conv_weight(w0, width).astype(jnp.bfloat16)
        self.w1t = _toeplitz_conv_weight(w1, width).astype(jnp.bfloat16)
        self.b0t = jnp.tile(b0, width).reshape(1, width * self.C1).astype(jnp.float32)
        self.b1t = jnp.tile(b1, width).reshape(1, width * self.C2).astype(jnp.float32)

    def __call__(self, x_nchw):
        return _stage_forward(x_nchw, self.w0t, self.b0t, self.w1t, self.b1t,
                              H=self.H, W=self.W,
                              C0=self.C0, C1=self.C1, C2=self.C2)


def make_stage(key, in_channels, out_channels, num_layers, height, width):
    params = []
    cin = in_channels
    for _ in range(num_layers):
        key, kw_, kb_ = jax.random.split(key, 3)
        fan_in = cin * 9
        bound = 1.0 / float(jnp.sqrt(fan_in))
        w = jax.random.uniform(kw_, (3, 3, cin, out_channels),
                               minval=-bound, maxval=bound, dtype=jnp.float32)
        b = jax.random.uniform(kb_, (out_channels,),
                               minval=-bound, maxval=bound, dtype=jnp.float32)
        params.append((w, b))
        cin = out_channels
    return StagePallas(out_channels, params, height, width)


# ---------------------------------------------------------------------------
# Pure-JAX reference (same bf16-operand / f32-accumulation rounding points)
# ---------------------------------------------------------------------------
def _reference_stage(x_nchw, params):
    x = x_nchw
    for w, b in params:
        y = jax.lax.conv_general_dilated(
            x.astype(jnp.bfloat16), w.astype(jnp.bfloat16),
            window_strides=(1, 1), padding="SAME",
            dimension_numbers=("NCHW", "HWIO", "NCHW"),
            preferred_element_type=jnp.float32)
        x = jnp.maximum(y + b.reshape(1, -1, 1, 1), 0.0)
    return x


if __name__ == "__main__":
    key = jax.random.PRNGKey(0)
    key, kx = jax.random.split(key)

    B, Cin, H, W = 2, 4, 16, 16
    out_channels = 8
    num_layers = 2

    x = jax.random.normal(kx, (B, Cin, H, W), dtype=jnp.float32)
    stage = make_stage(key, Cin, out_channels, num_layers, H, W)

    y = jax.block_until_ready(stage(x))
    assert y.shape == (B, out_channels, H, W), y.shape
    assert bool(jnp.all(jnp.isfinite(y)))

    y_ref = jax.block_until_ready(_reference_stage(x, stage.params))
    max_err = float(jnp.max(jnp.abs(y - y_ref)))
    assert max_err < 2e-2, f"max abs error vs reference conv: {max_err}"

    print("KERNEL_OK")
</pallas_src>

<mosaic_0001>
module attributes {stable_mosaic.version = 11 : i64} {
  func.func @_stage_kernel(%arg0: i32, %arg1: memref<1x16x64xf32, #tpu.memory_space<vmem>>, %arg2: memref<3x64x128xbf16, #tpu.memory_space<vmem>>, %arg3: memref<1x128xf32, #tpu.memory_space<vmem>>, %arg4: memref<3x128x128xbf16, #tpu.memory_space<vmem>>, %arg5: memref<1x128xf32, #tpu.memory_space<vmem>>, %arg6: memref<1x16x128xf32, #tpu.memory_space<vmem>>, %arg7: memref<18x64xf32, #tpu.memory_space<vmem>>, %arg8: memref<18x128xf32, #tpu.memory_space<vmem>>) attributes {dimension_semantics = [#tpu.dimension_semantics<parallel>], iteration_bounds = array<i64: 2>, scalar_prefetch = 0 : i64, scratch_operands = 2 : i64, tpu.core_type = #tpu.core_type<tc>, window_params = [{transform_indices = @transform_0, window_bounds = array<i64: 1, 16, 64>}, {pipeline_mode = #tpu.pipeline_mode<synchronous>, transform_indices = @transform_1, window_bounds = array<i64: 3, 64, 128>}, {pipeline_mode = #tpu.pipeline_mode<synchronous>, transform_indices = @transform_2, window_bounds = array<i64: 1, 128>}, {pipeline_mode = #tpu.pipeline_mode<synchronous>, transform_indices = @transform_3, window_bounds = array<i64: 3, 128, 128>}, {pipeline_mode = #tpu.pipeline_mode<synchronous>, transform_indices = @transform_4, window_bounds = array<i64: 1, 128>}, {transform_indices = @transform_5, window_bounds = array<i64: 1, 16, 128>}]} {
    %cst = arith.constant 0.000000e+00 : f32
    %0 = vector.broadcast %cst : f32 to vector<1x64xf32>
    %c0 = arith.constant 0 : index
    %c0_0 = arith.constant 0 : index
    %1 = vector.load %arg7[%c0, %c0_0] : memref<18x64xf32, #tpu.memory_space<vmem>>, vector<1x64xf32>
    tpu.vector_store %arg7[%c0, %c0_0], %0 {strides = array<i32>} : memref<18x64xf32, #tpu.memory_space<vmem>>, vector<1x64xf32>,
    %c17 = arith.constant 17 : index
    %c0_1 = arith.constant 0 : index
    %2 = vector.load %arg7[%c17, %c0_1] : memref<18x64xf32, #tpu.memory_space<vmem>>, vector<1x64xf32>
    tpu.vector_store %arg7[%c17, %c0_1], %0 {strides = array<i32>} : memref<18x64xf32, #tpu.memory_space<vmem>>, vector<1x64xf32>,
    %c0_2 = arith.constant 0 : index
    %c0_3 = arith.constant 0 : index
    %c0_4 = arith.constant 0 : index
    %3 = vector.load %arg1[%c0_2, %c0_3, %c0_4] : memref<1x16x64xf32, #tpu.memory_space<vmem>>, vector<1x16x64xf32>
    %4 = vector.shape_cast %3 : vector<1x16x64xf32> to vector<16x64xf32>
    %c1 = arith.constant 1 : index
    %c0_5 = arith.constant 0 : index
    %5 = vector.load %arg7[%c1, %c0_5] : memref<18x64xf32, #tpu.memory_space<vmem>>, vector<16x64xf32>
    tpu.vector_store %arg7[%c1, %c0_5], %4 {strides = array<i32>} : memref<18x64xf32, #tpu.memory_space<vmem>>, vector<16x64xf32>,
    %cst_6 = arith.constant 0.000000e+00 : f32
    %6 = vector.broadcast %cst_6 : f32 to vector<16x128xf32>
    %c0_7 = arith.constant 0 : index
    %c0_8 = arith.constant 0 : index
    %7 = vector.load %arg7[%c0_7, %c0_8] : memref<18x64xf32, #tpu.memory_space<vmem>>, vector<16x64xf32>
    %8 = arith.truncf %7 : vector<16x64xf32> to vector<16x64xbf16>
    %c0_9 = arith.constant 0 : index
    %c0_10 = arith.constant 0 : index
    %c0_11 = arith.constant 0 : index
    %9 = vector.load %arg2[%c0_9, %c0_10, %c0_11] : memref<3x64x128xbf16, #tpu.memory_space<vmem>>, vector<1x64x128xbf16>
    %10 = vector.shape_cast %9 : vector<1x64x128xbf16> to vector<64x128xbf16>
    %cst_12 = arith.constant dense<0.000000e+00> : vector<16x128xf32>
    %11 = tpu.matmul %8, %10, %cst_12 {dimension_numbers = #tpu.dot_dimension_numbers<[1], [0], [0], [1], [0, 0, 1, 1], [], []>} : vector<16x64xbf16>, vector<64x128xbf16>, vector<16x128xf32> -> vector<16x128xf32>
    %12 = arith.addf %6, %11 : vector<16x128xf32>
    %c1_13 = arith.constant 1 : index
    %c0_14 = arith.constant 0 : index
    %13 = vector.load %arg7[%c1_13, %c0_14] : memref<18x64xf32, #tpu.memory_space<vmem>>, vector<16x64xf32>
    %14 = arith.truncf %13 : vector<16x64xf32> to vector<16x64xbf16>
    %c1_15 = arith.constant 1 : index
    %c0_16 = arith.constant 0 : index
    %c0_17 = arith.constant 0 : index
    %15 = vector.load %arg2[%c1_15, %c0_16, %c0_17] : memref<3x64x128xbf16, #tpu.memory_space<vmem>>, vector<1x64x128xbf16>
    %16 = vector.shape_cast %15 : vector<1x64x128xbf16> to vector<64x128xbf16>
    %cst_18 = arith.constant dense<0.000000e+00> : vector<16x128xf32>
    %17 = tpu.matmul %14, %16, %cst_18 {dimension_numbers = #tpu.dot_dimension_numbers<[1], [0], [0], [1], [0, 0, 1, 1], [], []>} : vector<16x64xbf16>, vector<64x128xbf16>, vector<16x128xf32> -> vector<16x128xf32>
    %18 = arith.addf %12, %17 : vector<16x128xf32>
    %c2 = arith.constant 2 : index
    %c0_19 = arith.constant 0 : index
    %19 = vector.load %arg7[%c2, %c0_19] : memref<18x64xf32, #tpu.memory_space<vmem>>, vector<16x64xf32>
    %20 = arith.truncf %19 : vector<16x64xf32> to vector<16x64xbf16>
    %c2_20 = arith.constant 2 : index
    %c0_21 = arith.constant 0 : index
    %c0_22 = arith.constant 0 : index
    %21 = vector.load %arg2[%c2_20, %c0_21, %c0_22] : memref<3x64x128xbf16, #tpu.memory_space<vmem>>, vector<1x64x128xbf16>
    %22 = vector.shape_cast %21 : vector<1x64x128xbf16> to vector<64x128xbf16>
    %cst_23 = arith.constant dense<0.000000e+00> : vector<16x128xf32>
    %23 = tpu.matmul %20, %22, %cst_23 {dimension_numbers = #tpu.dot_dimension_numbers<[1], [0], [0], [1], [0, 0, 1, 1], [], []>} : vector<16x64xbf16>, vector<64x128xbf16>, vector<16x128xf32> -> vector<16x128xf32>
    %24 = arith.addf %18, %23 : vector<16x128xf32>
    %c0_24 = arith.constant 0 : index
    %c0_25 = arith.constant 0 : index
    %25 = vector.load %arg3[%c0_24, %c0_25] : memref<1x128xf32, #tpu.memory_space<vmem>>, vector<1x128xf32>
    %26 = vector.broadcast %25 : vector<1x128xf32> to vector<16x128xf32>
    %27 = arith.addf %24, %26 : vector<16x128xf32>
    %cst_26 = arith.constant 0.000000e+00 : f32
    %28 = vector.broadcast %cst_26 : f32 to vector<16x128xf32>
    %29 = arith.maximumf %27, %28 : vector<16x128xf32>
    %cst_27 = arith.constant 0.000000e+00 : f32
    %30 = vector.broadcast %cst_27 : f32 to vector<1x128xf32>
    %c0_28 = arith.constant 0 : index
    %c0_29 = arith.constant 0 : index
    %31 = vector.load %arg8[%c0_28, %c0_29] : memref<18x128xf32, #tpu.memory_space<vmem>>, vector<1x128xf32>
    tpu.vector_store %arg8[%c0_28, %c0_29], %30 {strides = array<i32>} : memref<18x128xf32, #tpu.memory_space<vmem>>, vector<1x128xf32>,
    %c17_30 = arith.constant 17 : index
    %c0_31 = arith.constant 0 : index
    %32 = vector.load %arg8[%c17_30, %c0_31] : memref<18x128xf32, #tpu.memory_space<vmem>>, vector<1x128xf32>
    tpu.vector_store %arg8[%c17_30, %c0_31], %30 {strides = array<i32>} : memref<18x128xf32, #tpu.memory_space<vmem>>, vector<1x128xf32>,
    %c1_32 = arith.constant 1 : index
    %c0_33 = arith.constant 0 : index
    %33 = vector.load %arg8[%c1_32, %c0_33] : memref<18x128xf32, #tpu.memory_space<vmem>>, vector<16x128xf32>
    tpu.vector_store %arg8[%c1_32, %c0_33], %29 {strides = array<i32>} : memref<18x128xf32, #tpu.memory_space<vmem>>, vector<16x128xf32>,
    %cst_34 = arith.constant 0.000000e+00 : f32
    %34 = vector.broadcast %cst_34 : f32 to vector<16x128xf32>
    %c0_35 = arith.constant 0 : index
    %c0_36 = arith.constant 0 : index
    %35 = vector.load %arg8[%c0_35, %c0_36] : memref<18x128xf32, #tpu.memory_space<vmem>>, vector<16x128xf32>
    %36 = arith.truncf %35 : vector<16x128xf32> to vector<16x128xbf16>
    %c0_37 = arith.constant 0 : index
    %c0_38 = arith.constant 0 : index
    %c0_39 = arith.constant 0 : index
    %37 = vector.load %arg4[%c0_37, %c0_38, %c0_39] : memref<3x128x128xbf16, #tpu.memory_space<vmem>>, vector<1x128x128xbf16>
    %38 = vector.shape_cast %37 : vector<1x128x128xbf16> to vector<128x128xbf16>
    %cst_40 = arith.constant dense<0.000000e+00> : vector<16x128xf32>
    %39 = tpu.matmul %36, %38, %cst_40 {dimension_numbers = #tpu.dot_dimension_numbers<[1], [0], [0], [1], [0, 0, 1, 1], [], []>} : vector<16x128xbf16>, vector<128x128xbf16>, vector<16x128xf32> -> vector<16x128xf32>
    %40 = arith.addf %34, %39 : vector<16x128xf32>
    %c1_41 = arith.constant 1 : index
    %c0_42 = arith.constant 0 : index
    %41 = vector.load %arg8[%c1_41, %c0_42] : memref<18x128xf32, #tpu.memory_space<vmem>>, vector<16x128xf32>
    %42 = arith.truncf %41 : vector<16x128xf32> to vector<16x128xbf16>
    %c1_43 = arith.constant 1 : index
    %c0_44 = arith.constant 0 : index
    %c0_45 = arith.constant 0 : index
    %43 = vector.load %arg4[%c1_43, %c0_44, %c0_45] : memref<3x128x128xbf16, #tpu.memory_space<vmem>>, vector<1x128x128xbf16>
    %44 = vector.shape_cast %43 : vector<1x128x128xbf16> to vector<128x128xbf16>
    %cst_46 = arith.constant dense<0.000000e+00> : vector<16x128xf32>
    %45 = tpu.matmul %42, %44, %cst_46 {dimension_numbers = #tpu.dot_dimension_numbers<[1], [0], [0], [1], [0, 0, 1, 1], [], []>} : vector<16x128xbf16>, vector<128x128xbf16>, vector<16x128xf32> -> vector<16x128xf32>
    %46 = arith.addf %40, %45 : vector<16x128xf32>
    %c2_47 = arith.constant 2 : index
    %c0_48 = arith.constant 0 : index
    %47 = vector.load %arg8[%c2_47, %c0_48] : memref<18x128xf32, #tpu.memory_space<vmem>>, vector<16x128xf32>
    %48 = arith.truncf %47 : vector<16x128xf32> to vector<16x128xbf16>
    %c2_49 = arith.constant 2 : index
    %c0_50 = arith.constant 0 : index
    %c0_51 = arith.constant 0 : index
    %49 = vector.load %arg4[%c2_49, %c0_50, %c0_51] : memref<3x128x128xbf16, #tpu.memory_space<vmem>>, vector<1x128x128xbf16>
    %50 = vector.shape_cast %49 : vector<1x128x128xbf16> to vector<128x128xbf16>
    %cst_52 = arith.constant dense<0.000000e+00> : vector<16x128xf32>
    %51 = tpu.matmul %48, %50, %cst_52 {dimension_numbers = #tpu.dot_dimension_numbers<[1], [0], [0], [1], [0, 0, 1, 1], [], []>} : vector<16x128xbf16>, vector<128x128xbf16>, vector<16x128xf32> -> vector<16x128xf32>
    %52 = arith.addf %46, %51 : vector<16x128xf32>
    %c0_53 = arith.constant 0 : index
    %c0_54 = arith.constant 0 : index
    %53 = vector.load %arg5[%c0_53, %c0_54] : memref<1x128xf32, #tpu.memory_space<vmem>>, vector<1x128xf32>
    %54 = vector.broadcast %53 : vector<1x128xf32> to vector<16x128xf32>
    %55 = arith.addf %52, %54 : vector<16x128xf32>
    %cst_55 = arith.constant 0.000000e+00 : f32
    %56 = vector.broadcast %cst_55 : f32 to vector<16x128xf32>
    %57 = arith.maximumf %55, %56 : vector<16x128xf32>
    %c0_56 = arith.constant 0 : index
    %c0_57 = arith.constant 0 : index
    %c0_58 = arith.constant 0 : index
    %58 = vector.load %arg6[%c0_56, %c0_57, %c0_58] : memref<1x16x128xf32, #tpu.memory_space<vmem>>, vector<1x16x128xf32>
    %59 = vector.shape_cast %58 : vector<1x16x128xf32> to vector<16x128xf32>
    %60 = vector.shape_cast %57 : vector<16x128xf32> to vector<1x16x128xf32>
    tpu.vector_store %arg6[%c0_56, %c0_57, %c0_58], %60 {strides = array<i32>} : memref<1x16x128xf32, #tpu.memory_space<vmem>>, vector<1x16x128xf32>,
    return
  }
  func.func @transform_0(%arg0: i32) -> (i32, i32, i32) {
    %c0_i32 = arith.constant 0 : i32
    %c0_i32_0 = arith.constant 0 : i32
    %c0_i32_1 = arith.constant 0 : i32
    return %arg0, %c0_i32, %c0_i32_0 : i32, i32, i32
  }
  func.func @transform_1(%arg0: i32) -> (i32, i32, i32) {
    %c0_i32 = arith.constant 0 : i32
    %c0_i32_0 = arith.constant 0 : i32
    %c0_i32_1 = arith.constant 0 : i32
    %c0_i32_2 = arith.constant 0 : i32
    return %c0_i32, %c0_i32_0, %c0_i32_1 : i32, i32, i32
  }
  func.func @transform_2(%arg0: i32) -> (i32, i32) {
    %c0_i32 = arith.constant 0 : i32
    %c0_i32_0 = arith.constant 0 : i32
    %c0_i32_1 = arith.constant 0 : i32
    return %c0_i32, %c0_i32_0 : i32, i32
  }
  func.func @transform_3(%arg0: i32) -> (i32, i32, i32) {
    %c0_i32 = arith.constant 0 : i32
    %c0_i32_0 = arith.constant 0 : i32
    %c0_i32_1 = arith.constant 0 : i32
    %c0_i32_2 = arith.constant 0 : i32
    return %c0_i32, %c0_i32_0, %c0_i32_1 : i32, i32, i32
  }
  func.func @transform_4(%arg0: i32) -> (i32, i32) {
    %c0_i32 = arith.constant 0 : i32
    %c0_i32_0 = arith.constant 0 : i32
    %c0_i32_1 = arith.constant 0 : i32
    return %c0_i32, %c0_i32_0 : i32, i32
  }
  func.func @transform_5(%arg0: i32) -> (i32, i32, i32) {
    %c0_i32 = arith.constant 0 : i32
    %c0_i32_0 = arith.constant 0 : i32
    %c0_i32_1 = arith.constant 0 : i32
    return %arg0, %c0_i32, %c0_i32_0 : i32, i32, i32
  }
}

</mosaic_0001>

<bundles_post_ra>
// kernel: _stage_forward.1
= control target key start
LH: loop header
LB: loop body
LE: loop exit
PB: predicated region body
PF: predicated region fallthrough
CT: control target
= control target key end

     0   :  { %s1012_s18 = smov 0   ;;  %s1155_s0 = inlined_call_operand.vmem [shape: f32[2,16,64], index: 0, kind: input, shape index: {}]   ;;  %s1156_s1 = inlined_call_operand.vmem [shape: bf16[3,64,128], index: 1, kind: input, shape index: {}]   ;;  %s1157_s2 = inlined_call_operand.vmem [shape: f32[1,128], index: 2, kind: input, shape index: {}]   ;;  %s1158_s3 = inlined_call_operand.vmem [shape: bf16[3,128,128], index: 3, kind: input, shape index: {}]   ;;  %s1159_s4 = inlined_call_operand.vmem [shape: f32[1,128], index: 4, kind: input, shape index: {}]   ;;  %s1160_s5 = inlined_call_operand.vmem [shape: f32[2,16,128], index: 5, kind: output, shape index: {}]  }
   0x1 LB: > { %s718_s19 = sadd.s32 4294967295, %s979_s18   ;;  %p722_p0 = scmp.ge.s32.totalorder %s979_s18, 1  ;;  %s979_s18 = sphi %s1012_s18, %s15_s18  }
   0x2   : > { %p187_p1 = scmp.lt.s32.totalorder %s979_s18, 3 }
   0x4   : > { %p188_p2 = pnand %p722_p0, %p187_p1 }
   0x5   : > { %p215_p3 = scmp.lt.s32.totalorder (!%p188_p2), %s718_s19, 1 }
   0x6   : > { %191 = sbr.rel (%p188_p2) target bundleno = 342 (0x156), region = 40 }
   0xb   : > { %v933_v0 = vld [vmem:[%s1156_s1 + $0x38] sm:$0xff]  ;;  %vm226_vm0 = vcmask 516096   ;;  %v932_v2 = vld [vmem:[%s1156_s1 + $0x30] sm:$0xff]  ;;  %s1162_s19 = smov (!%p215_p3, %s718_s19), 1  ;;  %v981_v4 = vmov 0.0   ;;  %vm231_vm1 = vcmask 523264  }
   0xc   : > { %v929_v1 = vld [vmem:[%s1156_s1 + $0x18] sm:$0xff]  ;;  %288 = vmatpush.bf16.msra.mxu2 %v933_v0  ;;  %v928_v3 = vld [vmem:[%s1156_s1 + $0x10] sm:$0xff]  ;;  %227 = vst.msk [vmem:[#allocation2] sm:$0x1] %vm226_vm0, %v981_v4  ;;  %s924_s28 = sshll.u32 %s1162_s19, 4  ;;  %v931_v5 = vld [vmem:[%s1156_s1 + $0x28] sm:$0xff] }
   0xd   : > { %329 = vmatpush.bf16.msra.mxu1 %v929_v1  ;;  %228 = vst.msk [vmem:[#allocation2 + $0x11] sm:$0x1] %vm226_vm0, %v981_v4  ;;  %s219_s8 = scalar_lea.vmem %s1155_s0, %s924_s28  ;;  %v927_v6 = vld [vmem:[%s1156_s1 + $0x8] sm:$0xff]  ;;  %v930_v9 = vld [vmem:[%s1156_s1 + $0x20] sm:$0xff]  ;;  %v937_v11 = vld [vmem:[%s1156_s1 + $0x58] sm:$0xff]  ;;  %s224_s11 = scalar_lea.vmem %s1160_s5, %s924_s28 }
   0xe   : > { %402 = vst [vmem:[#allocation3] sm:$0x1] %v981_v4  ;;  %v229_v7 = vld [vmem:[%s219_s8] sm:$0xff]  ;;  %v230_v8 = vld [vmem:[%s219_s8 + $0x8] sm:$0xff]  ;;  %v936_v15 = vld [vmem:[%s1156_s1 + $0x50] sm:$0xff] }
   0xf   : > { %403 = vst [vmem:[#allocation3 + $0x11] sm:$0x1] %v981_v4  ;;  %v926_v10 = vld [vmem:[%s1156_s1] sm:$0xff]  ;;  %v935_v19 = vld [vmem:[%s1156_s1 + $0x48] sm:$0xff]  ;;  %v953_v24 = vld [vmem:[%s1158_s3 + $0x78] sm:$0xff] }
  0x10   : > { %289 = vmatpush.bf16.msra.mxu2 %v932_v2  ;;  %232 = vst.msk [vmem:[#allocation2 + $0x1] sm:$0xff] %vm231_vm1, %v229_v7  ;;  %v934_v20 = vld [vmem:[%s1156_s1 + $0x40] sm:$0xff]  ;;  %493 = vmatpush.bf16.msra.mxu3 %v953_v24  ;;  %v952_v25 = vld [vmem:[%s1158_s3 + $0x70] sm:$0xff]  ;;  %v945_v26 = vld [vmem:[%s1158_s3 + $0x38] sm:$0xff] }
  0x11   : > { %330 = vmatpush.bf16.msra.mxu1 %v928_v3  ;;  %233 = vst.msk [vmem:[#allocation2 + $0x9] sm:$0xff] %vm231_vm1, %v230_v8  ;;  %v961_v27 = vld [vmem:[%s1158_s3 + $0xb8] sm:$0xff]  ;;  %v951_v28 = vld [vmem:[%s1158_s3 + $0x68] sm:$0xff]  ;;  %555 = vmatpush.bf16.msra.mxu0 %v945_v26  ;;  %v944_v29 = vld [vmem:[%s1158_s3 + $0x30] sm:$0xff] }
  0x12   : > { %v960_v30 = vld [vmem:[%s1158_s3 + $0xb0] sm:$0xff]  ;;  %v950_v31 = vld [vmem:[%s1158_s3 + $0x60] sm:$0xff]  ;;  %v943_v32 = vld [vmem:[%s1158_s3 + $0x28] sm:$0xff] }
  0x13   : > { %v959_v33 = vld [vmem:[%s1158_s3 + $0xa8] sm:$0xff]  ;;  %v949_v34 = vld [vmem:[%s1158_s3 + $0x58] sm:$0xff]  ;;  %v942_v35 = vld [vmem:[%s1158_s3 + $0x20] sm:$0xff] }
  0x14   : > { %290 = vmatpush.bf16.msra.mxu2 %v931_v5  ;;  %494 = vmatpush.bf16.msra.mxu3 %v952_v25  ;;  %v958_v36 = vld [vmem:[%s1158_s3 + $0xa0] sm:$0xff]  ;;  %v948_v37 = vld [vmem:[%s1158_s3 + $0x50] sm:$0xff]  ;;  %v941_v38 = vld [vmem:[%s1158_s3 + $0x18] sm:$0xff] }
  0x15   : > { %331 = vmatpush.bf16.msra.mxu1 %v927_v6  ;;  %556 = vmatpush.bf16.msra.mxu0 %v944_v29  ;;  %v957_v39 = vld [vmem:[%s1158_s3 + $0x98] sm:$0xff]  ;;  %v947_v40 = vld [vmem:[%s1158_s3 + $0x48] sm:$0xff]  ;;  %v940_v41 = vld [vmem:[%s1158_s3 + $0x10] sm:$0xff] }
  0x16   : > { %v956_v42 = vld [vmem:[%s1158_s3 + $0x90] sm:$0xff]  ;;  %v946_v43 = vld [vmem:[%s1158_s3 + $0x40] sm:$0xff]  ;;  %v939_v44 = vld [vmem:[%s1158_s3 + $0x8] sm:$0xff] }
  0x17   : > { %v245_v12 = vld [vmem:[#allocation2 + $0x1] sm:$0xff]  ;;  %v971_v52 = vld [vmem:[%s1157_s2] ss:$0 sm:$0xff] }
  0x18   : > { %291 = vmatpush.bf16.msra.mxu2 %v930_v9  ;;  %v234_v13 = vld [vmem:[#allocation2] sm:$0xff]  ;;  %v246_v14 = vld [vmem:[#allocation2 + $0x9] sm:$0xff]  ;;  %495 = vmatpush.bf16.msra.mxu3 %v951_v28 }
  0x19   : > { %332 = vmatpush.bf16.msra.mxu1 %v926_v10  ;;  %v235_v16 = vld [vmem:[#allocation2 + $0x8] sm:$0xff]  ;;  %v247_v17 = vpack.c.bf16 %v246_v14, %v245_v12  ;;  %557 = vmatpush.bf16.msra.mxu0 %v943_v32  ;;  %v938_v47 = vld [vmem:[%s1158_s3] sm:$0xff] }
  0x1a   : > { %v236_v18 = vpack.c.bf16 %v235_v16, %v234_v13  ;;  %v339_v21 = vld [vmem:[#allocation2 + $0x2] sm:$0xff]  ;;  %v340_v22 = vld [vmem:[#allocation2 + $0xa] sm:$0xff]  ;;  %v972_v10 = vld [vmem:[%s1159_s4] ss:$0 sm:$0xff] }
  0x1b   : > { %751 = vmatmul.msk.bf16.vlgmr.msra.gmra.mxu2 %vm231_vm1, %v247_v17  ;;  %v341_v23 = vpack.c.bf16 %v340_v22, %v339_v21  ;;  %v955_v45 = vld [vmem:[%s1158_s3 + $0x88] sm:$0xff]  ;;  %v954_v48 = vld [vmem:[%s1158_s3 + $0x80] sm:$0xff] }
  0x1c   : > { %382 = vmatpush.bf16.msrb.mxu2 %v937_v11  ;;  %768 = vmatmul.msk.bf16.vlgmr.msra.gmra.mxu1 %vm231_vm1, %v236_v18 }
  0x1d   : > { %637 = vmatpush.bf16.msrb.mxu1 %v961_v27  ;;  %496 = vmatpush.bf16.msra.mxu3 %v950_v31 }
  0x1e   : > { %558 = vmatpush.bf16.msra.mxu0 %v942_v35 }
  0x20   : > { %383 = vmatpush.bf16.msrb.mxu2 %v936_v15 }
  0x21   : > { %638 = vmatpush.bf16.msrb.mxu1 %v960_v30  ;;  %497 = vmatpush.bf16.msra.mxu3 %v949_v34 }
  0x22   : > { %559 = vmatpush.bf16.msra.mxu0 %v941_v38 }
  0x24   : > { %384 = vmatpush.bf16.msrb.mxu2 %v935_v19 }
  0x25   : > { %639 = vmatpush.bf16.msrb.mxu1 %v959_v33  ;;  %498 = vmatpush.bf16.msra.mxu3 %v948_v37 }
  0x26   : > { %560 = vmatpush.bf16.msra.mxu0 %v940_v41 }
  0x28   : > { %385 = vmatpush.bf16.msrb.mxu2 %v934_v20 }
  0x29   : > { %640 = vmatpush.bf16.msrb.mxu1 %v958_v36  ;;  %499 = vmatpush.bf16.msra.mxu3 %v947_v40 }
  0x2a   : > { %561 = vmatpush.bf16.msra.mxu0 %v939_v44 }
  0x2b   : > { %793 = vmatmul.msk.bf16.vlgmr.msrb.gmra.mxu2 %vm231_vm1, %v341_v23 }
  0x2d   : > { %641 = vmatpush.bf16.msrb.mxu1 %v957_v39  ;;  %500 = vmatpush.bf16.msra.mxu3 %v946_v43 }
  0x2e   : > { %562 = vmatpush.bf16.msra.mxu0 %v938_v47 }
  0x31   : > { %642 = vmatpush.bf16.msrb.mxu1 %v956_v42 }
  0x35   : > { %643 = vmatpush.bf16.msrb.mxu1 %v955_v45 }
  0x39   : > { %644 = vmatpush.bf16.msrb.mxu1 %v954_v48 }
  0x99   : > { %v334_v50 = vpop.f32.mrf.mxu1 }
  0x9e   : > { %v293_v46 = vpop.f32.mrf.mxu2 }
  0x9f   : > { %v335_v51 = vadd.f32 %v334_v50, %v293_v46 }
  0xa1   : > { %v336_v56 = vpop.f32.mrf.mxu1 }
  0xa6   : > { %v295_v49 = vpop.f32.mrf.mxu2 }
  0xa7   : > { %v337_v58 = vadd.f32 %v336_v56, %v295_v49 }
  0xae   : > { %v387_v53 = vpop.f32.mrf.mxu2 }
  0xaf   : > { %v392_v54 = vadd.f32 %v387_v53, %v335_v51 }
  0xb1   : > { %v398_v55 = vadd.f32 %v971_v52, %v392_v54 }
  0xb3   : > { %v400_v57 = vmax.f32 %v398_v55, 0.0 }
  0xb5   : > { %404 = vst [vmem:[#allocation3 + $0x1] sm:$0xff] %v400_v57 }
  0xb6   : > { %v389_v59 = vpop.f32.mrf.mxu2 }
  0xb7   : > { %v393_v60 = vadd.f32 %v389_v59, %v337_v58 }
  0xb9   : > { %v399_v61 = vadd.f32 %v971_v52, %v393_v60 }
  0xbb   : > { %v401_v62 = vmax.f32 %v399_v61, 0.0 }
  0xbc   : > { %v406_v0 = vld [vmem:[#allocation3] sm:$0xff] }
  0xbd   : > { %405 = vst [vmem:[#allocation3 + $0x9] sm:$0xff] %v401_v62  ;;  %v427_v63 = vpack.c.bf16 %v401_v62, %v400_v57 }
  0xbf   : > { %501 = vmatmul.bf16.vlgmr.msra.gmra.mxu3 %v427_v63 }
  0xc4   : > { %v407_v1 = vld [vmem:[#allocation3 + $0x8] sm:$0xff] }
  0xc5   : > { %v569_v2 = vld [vmem:[#allocation3 + $0x2] sm:$0xff]  ;;  %v570_v3 = vld [vmem:[#allocation3 + $0xa] sm:$0xff]  ;;  %v408_v4 = vpack.c.bf16 %v407_v1, %v406_v0 }
  0xc6   : > { %v571_v5 = vpack.c.bf16 %v570_v3, %v569_v2 }
  0xc7   : > { %563 = vmatmul.bf16.vlgmr.msra.gmra.mxu0 %v408_v4 }
  0xc8   : > { %645 = vmatmul.bf16.vlgmr.msrb.gmra.mxu1 %v571_v5 }
 0x142   : > { %v502_v6 = vpop.f32.mrf.mxu3 }
 0x144   : > { %v564_v7 = vpop.f32.mrf.mxu0 }
 0x145   : > { %v646_v8 = vpop.f32.mrf.mxu1  ;;  %v565_v9 = vadd.f32 %v564_v7, %v502_v6 }
 0x147   : > { %v651_v11 = vadd.f32 %v646_v8, %v565_v9 }
 0x149   : > { %v657_v12 = vadd.f32 %v972_v10, %v651_v11 }
 0x14a   : > { %v504_v15 = vpop.f32.mrf.mxu3 }
 0x14b   : > { %v659_v13 = vmax.f32 %v657_v12, 0.0 }
 0x14c   : > { %v566_v14 = vpop.f32.mrf.mxu0 }
 0x14d   : > { %661 = vst [vmem:[%s224_s11] sm:$0xff] %v659_v13  ;;  %v567_v16 = vadd.f32 %v566_v14, %v504_v15  ;;  %v648_v17 = vpop.f32.mrf.mxu1 }
 0x14f   : > { %v652_v18 = vadd.f32 %v648_v17, %v567_v16 }
 0x151   : > { %v658_v19 = vadd.f32 %v972_v10, %v652_v18 }
 0x153   : > { %v660_v20 = vmax.f32 %v658_v19, 0.0 }
 0x155   : > { %662 = vst [vmem:[%s224_s11 + $0x8] sm:$0xff] %v660_v20 }
 0x156 PF: > { %s15_s18 = sadd.s32 1, %s979_s18  }
 0x157   : > { %p12_p4 = scmp.ge.s32.totalorder %s15_s18, 4  }
 0x159   :  { %14 = sbr.rel (!%p12_p4) target bundleno = 1 (0x1), region = 74 }

</bundles_post_ra>
